<compile_context>
chip_gen: v6e
topology: v6e:2x2x1
jax: 0.10.0
libtpu: 0.0.40
codegen_flags: <defaults>
</compile_context>

<pallas_src>
import jax
import jax.numpy as jnp
from jax.experimental import pallas as pl
from jax.experimental.pallas import tpu as pltpu


def dnn_kernel(mw_ref,                          # (3,) SMEM: gamma * softmax(scalars)
               x_ref,                           # (tile_m, 3, D)  VMEM
               w1_ref, b1_ref,                  # (D, H1), (1, H1)
               w2_ref, b2_ref,                  # (H1, H2), (1, H2)
               w3_ref, b3_ref,                  # (H2, C), (1, C)
               o_ref):                          # (tile_m, C)
    x = x_ref[...]                              # (tile_m, 3, D)
    # Scalar-weighted mixture of the 3 views (mixture axis = sublane selects).
    mixed = (mw_ref[0] * x[:, 0, :]
             + mw_ref[1] * x[:, 1, :]
             + mw_ref[2] * x[:, 2, :])          # (tile_m, D)

    # TODO(synk): nn.Dropout layers are identity in eval mode; training-mode
    # stochastic dropout is intentionally not implemented.

    # MLP: Linear -> tanh -> Linear -> tanh -> Linear  (MXU matmuls, f32 acc)
    h = jnp.tanh(
        jnp.dot(mixed, w1_ref[...], preferred_element_type=jnp.float32) + b1_ref[...]
    )
    h = jnp.tanh(
        jnp.dot(h, w2_ref[...], preferred_element_type=jnp.float32) + b2_ref[...]
    )
    o_ref[...] = (
        jnp.dot(h, w3_ref[...], preferred_element_type=jnp.float32) + b3_ref[...]
    )


def _round_up(a, b):
    return (a + b - 1) // b * b


@jax.jit
def dnn_forward(x, params):
    """x: (batch, 3, input_size) float32 (native PyTorch layout).
    Returns (batch, num_classes)."""
    scalars, gamma, w1, b1, w2, b2, w3, b3 = params
    B, M, D = x.shape
    H1 = w1.shape[1]
    H2 = w2.shape[1]
    C = w3.shape[1]

    # 3-element softmax * gamma done in the same jit: fuses into parameter
    # prep, keeps exp/divide off the kernel's scalar path.
    mix_w = (gamma[0] * jax.nn.softmax(scalars)).astype(jnp.float32)

    # Grid over batch; tile_m is a multiple of 8 (sublane-aligned).
    tile_m = min(256, _round_up(B, 8))
    B_pad = _round_up(B, tile_m)
    if B_pad != B:
        x = jnp.pad(x, ((0, B_pad - B), (0, 0), (0, 0)))

    out = pl.pallas_call(
        dnn_kernel,
        out_shape=jax.ShapeDtypeStruct((B_pad, C), jnp.float32),
        grid=(B_pad // tile_m,),
        in_specs=[
            pl.BlockSpec(memory_space=pltpu.MemorySpace.SMEM),       # mix_w
            pl.BlockSpec((tile_m, M, D), lambda i: (i, 0, 0)),       # x
            pl.BlockSpec((D, H1), lambda i: (0, 0)),                 # w1
            pl.BlockSpec((1, H1), lambda i: (0, 0)),                 # b1
            pl.BlockSpec((H1, H2), lambda i: (0, 0)),                # w2
            pl.BlockSpec((1, H2), lambda i: (0, 0)),                 # b2
            pl.BlockSpec((H2, C), lambda i: (0, 0)),                 # w3
            pl.BlockSpec((1, C), lambda i: (0, 0)),                  # b3
        ],
        out_specs=pl.BlockSpec((tile_m, C), lambda i: (i, 0)),
        compiler_params=pltpu.CompilerParams(
            dimension_semantics=("parallel",)),                      # 2 TCs on v7x
    )(mix_w, x, w1, b1, w2, b2, w3, b3)
    return out[:B]


def make_params(key, input_size, hidden, num_classes):
    """Deterministic synthetic parameters.  Linear weights stored as (in, out)
    (i.e. PyTorch weight.T) so the kernel does x @ W + b."""
    ks = jax.random.split(key, 6)
    h1, h2 = hidden
    # mixture_size=3 scalar parameters (init [0, 1, 0.5]) and gamma=1.0,
    # matching the module's learnable scalar mixture.
    scalars = jnp.array([0.0, 1.0, 0.5], dtype=jnp.float32)
    gamma = jnp.array([1.0], dtype=jnp.float32)
    w1 = 0.1 * jax.random.normal(ks[0], (input_size, h1), jnp.float32)
    b1 = 0.1 * jax.random.normal(ks[1], (1, h1), jnp.float32)
    w2 = 0.1 * jax.random.normal(ks[2], (h1, h2), jnp.float32)
    b2 = 0.1 * jax.random.normal(ks[3], (1, h2), jnp.float32)
    w3 = 0.1 * jax.random.normal(ks[4], (h2, num_classes), jnp.float32)
    b3 = 0.1 * jax.random.normal(ks[5], (1, num_classes), jnp.float32)
    return scalars, gamma, w1, b1, w2, b2, w3, b3


def dnn_reference(x, params):
    """Pure-JAX reference mirroring the PyTorch forward (eval mode)."""
    scalars, gamma, w1, b1, w2, b2, w3, b3 = params
    w = jax.nn.softmax(scalars)
    mixed = gamma[0] * (
        w[0] * x[:, 0, :] + w[1] * x[:, 1, :] + w[2] * x[:, 2, :]
    )
    h = jnp.tanh(mixed @ w1 + b1)
    h = jnp.tanh(h @ w2 + b2)
    return h @ w3 + b3


if __name__ == "__main__":
    # options = {'input_size': 32, 'layers': [32, 32], 'num_classes': 4,
    #            'activation': 'tanh', 'dropout': 0.2}
    batch, mixture, input_size = 8, 3, 32
    hidden = (32, 32)
    num_classes = 4

    key = jax.random.PRNGKey(0)
    kx, kp = jax.random.split(key)
    x = jax.random.normal(kx, (batch, mixture, input_size), jnp.float32)
    params = make_params(kp, input_size, hidden, num_classes)

    out = dnn_forward(x, params)
    out = jax.block_until_ready(out)

    ref = dnn_reference(x, params)
    assert out.shape == (batch, num_classes)
    assert jnp.allclose(out, ref, atol=1e-5, rtol=1e-5), "mismatch vs reference"
    print("KERNEL_OK")
</pallas_src>

<mosaic_0001>
module attributes {stable_mosaic.version = 11 : i64} {
  func.func @dnn_kernel(%arg0: i32, %arg1: memref<3xf32, #tpu.memory_space<smem>>, %arg2: memref<8x3x32xf32, #tpu.memory_space<vmem>>, %arg3: memref<32x32xf32, #tpu.memory_space<vmem>>, %arg4: memref<1x32xf32, #tpu.memory_space<vmem>>, %arg5: memref<32x32xf32, #tpu.memory_space<vmem>>, %arg6: memref<1x32xf32, #tpu.memory_space<vmem>>, %arg7: memref<32x4xf32, #tpu.memory_space<vmem>>, %arg8: memref<1x4xf32, #tpu.memory_space<vmem>>, %arg9: memref<8x4xf32, #tpu.memory_space<vmem>>) attributes {dimension_semantics = [#tpu.dimension_semantics<parallel>], iteration_bounds = array<i64: 1>, scalar_prefetch = 0 : i64, scratch_operands = 0 : i64, tpu.core_type = #tpu.core_type<tc>, window_params = [{transform_indices = @transform_0, window_bounds = array<i64: 3>}, {transform_indices = @transform_1, window_bounds = array<i64: 8, 3, 32>}, {pipeline_mode = #tpu.pipeline_mode<synchronous>, transform_indices = @transform_2, window_bounds = array<i64: 32, 32>}, {pipeline_mode = #tpu.pipeline_mode<synchronous>, transform_indices = @transform_3, window_bounds = array<i64: 1, 32>}, {pipeline_mode = #tpu.pipeline_mode<synchronous>, transform_indices = @transform_4, window_bounds = array<i64: 32, 32>}, {pipeline_mode = #tpu.pipeline_mode<synchronous>, transform_indices = @transform_5, window_bounds = array<i64: 1, 32>}, {pipeline_mode = #tpu.pipeline_mode<synchronous>, transform_indices = @transform_6, window_bounds = array<i64: 32, 4>}, {pipeline_mode = #tpu.pipeline_mode<synchronous>, transform_indices = @transform_7, window_bounds = array<i64: 1, 4>}, {transform_indices = @transform_8, window_bounds = array<i64: 8, 4>}]} {
    %c0 = arith.constant 0 : index
    %c0_0 = arith.constant 0 : index
    %c0_1 = arith.constant 0 : index
    %0 = vector.load %arg2[%c0, %c0_0, %c0_1] : memref<8x3x32xf32, #tpu.memory_space<vmem>>, vector<8x3x32xf32>
    %c0_2 = arith.constant 0 : index
    %1 = memref.load %arg1[%c0_2] : memref<3xf32, #tpu.memory_space<smem>>
    %2 = vector.extract_strided_slice %0 {offsets = [0, 0, 0], sizes = [8, 1, 32], strides = [1, 1, 1]} : vector<8x3x32xf32> to vector<8x1x32xf32>
    %3 = vector.shape_cast %2 : vector<8x1x32xf32> to vector<8x32xf32>
    %4 = vector.broadcast %1 : f32 to vector<8x32xf32>
    %5 = arith.mulf %4, %3 : vector<8x32xf32>
    %c1 = arith.constant 1 : index
    %6 = memref.load %arg1[%c1] : memref<3xf32, #tpu.memory_space<smem>>
    %7 = vector.extract_strided_slice %0 {offsets = [0, 1, 0], sizes = [8, 1, 32], strides = [1, 1, 1]} : vector<8x3x32xf32> to vector<8x1x32xf32>
    %8 = vector.shape_cast %7 : vector<8x1x32xf32> to vector<8x32xf32>
    %9 = vector.broadcast %6 : f32 to vector<8x32xf32>
    %10 = arith.mulf %9, %8 : vector<8x32xf32>
    %11 = arith.addf %5, %10 : vector<8x32xf32>
    %c2 = arith.constant 2 : index
    %12 = memref.load %arg1[%c2] : memref<3xf32, #tpu.memory_space<smem>>
    %13 = vector.extract_strided_slice %0 {offsets = [0, 2, 0], sizes = [8, 1, 32], strides = [1, 1, 1]} : vector<8x3x32xf32> to vector<8x1x32xf32>
    %14 = vector.shape_cast %13 : vector<8x1x32xf32> to vector<8x32xf32>
    %15 = vector.broadcast %12 : f32 to vector<8x32xf32>
    %16 = arith.mulf %15, %14 : vector<8x32xf32>
    %17 = arith.addf %11, %16 : vector<8x32xf32>
    %c0_3 = arith.constant 0 : index
    %c0_4 = arith.constant 0 : index
    %18 = vector.load %arg3[%c0_3, %c0_4] : memref<32x32xf32, #tpu.memory_space<vmem>>, vector<32x32xf32>
    %cst = arith.constant dense<0.000000e+00> : vector<8x32xf32>
    %19 = tpu.matmul %17, %18, %cst {dimension_numbers = #tpu.dot_dimension_numbers<[1], [0], [0], [1], [0, 0, 1, 1], [], []>} : vector<8x32xf32>, vector<32x32xf32>, vector<8x32xf32> -> vector<8x32xf32>
    %c0_5 = arith.constant 0 : index
    %c0_6 = arith.constant 0 : index
    %20 = vector.load %arg4[%c0_5, %c0_6] : memref<1x32xf32, #tpu.memory_space<vmem>>, vector<1x32xf32>
    %21 = vector.broadcast %20 : vector<1x32xf32> to vector<8x32xf32>
    %22 = arith.addf %19, %21 : vector<8x32xf32>
    %23 = math.tanh %22 : vector<8x32xf32>
    %c0_7 = arith.constant 0 : index
    %c0_8 = arith.constant 0 : index
    %24 = vector.load %arg5[%c0_7, %c0_8] : memref<32x32xf32, #tpu.memory_space<vmem>>, vector<32x32xf32>
    %cst_9 = arith.constant dense<0.000000e+00> : vector<8x32xf32>
    %25 = tpu.matmul %23, %24, %cst_9 {dimension_numbers = #tpu.dot_dimension_numbers<[1], [0], [0], [1], [0, 0, 1, 1], [], []>} : vector<8x32xf32>, vector<32x32xf32>, vector<8x32xf32> -> vector<8x32xf32>
    %c0_10 = arith.constant 0 : index
    %c0_11 = arith.constant 0 : index
    %26 = vector.load %arg6[%c0_10, %c0_11] : memref<1x32xf32, #tpu.memory_space<vmem>>, vector<1x32xf32>
    %27 = vector.broadcast %26 : vector<1x32xf32> to vector<8x32xf32>
    %28 = arith.addf %25, %27 : vector<8x32xf32>
    %29 = math.tanh %28 : vector<8x32xf32>
    %c0_12 = arith.constant 0 : index
    %c0_13 = arith.constant 0 : index
    %30 = vector.load %arg7[%c0_12, %c0_13] : memref<32x4xf32, #tpu.memory_space<vmem>>, vector<32x4xf32>
    %cst_14 = arith.constant dense<0.000000e+00> : vector<8x4xf32>
    %31 = tpu.matmul %29, %30, %cst_14 {dimension_numbers = #tpu.dot_dimension_numbers<[1], [0], [0], [1], [0, 0, 1, 1], [], []>} : vector<8x32xf32>, vector<32x4xf32>, vector<8x4xf32> -> vector<8x4xf32>
    %c0_15 = arith.constant 0 : index
    %c0_16 = arith.constant 0 : index
    %32 = vector.load %arg8[%c0_15, %c0_16] : memref<1x4xf32, #tpu.memory_space<vmem>>, vector<1x4xf32>
    %33 = vector.broadcast %32 : vector<1x4xf32> to vector<8x4xf32>
    %34 = arith.addf %31, %33 : vector<8x4xf32>
    %c0_17 = arith.constant 0 : index
    %c0_18 = arith.constant 0 : index
    %35 = vector.load %arg9[%c0_17, %c0_18] : memref<8x4xf32, #tpu.memory_space<vmem>>, vector<8x4xf32>
    tpu.vector_store %arg9[%c0_17, %c0_18], %34 {strides = array<i32>} : memref<8x4xf32, #tpu.memory_space<vmem>>, vector<8x4xf32>,
    return
  }
  func.func @transform_0(%arg0: i32) -> i32 {
    %c0_i32 = arith.constant 0 : i32
    %c0_i32_0 = arith.constant 0 : i32
    return %c0_i32 : i32
  }
  func.func @transform_1(%arg0: i32) -> (i32, i32, i32) {
    %c0_i32 = arith.constant 0 : i32
    %c0_i32_0 = arith.constant 0 : i32
    %c0_i32_1 = arith.constant 0 : i32
    return %arg0, %c0_i32, %c0_i32_0 : i32, i32, i32
  }
  func.func @transform_2(%arg0: i32) -> (i32, i32) {
    %c0_i32 = arith.constant 0 : i32
    %c0_i32_0 = arith.constant 0 : i32
    %c0_i32_1 = arith.constant 0 : i32
    return %c0_i32, %c0_i32_0 : i32, i32
  }
  func.func @transform_3(%arg0: i32) -> (i32, i32) {
    %c0_i32 = arith.constant 0 : i32
    %c0_i32_0 = arith.constant 0 : i32
    %c0_i32_1 = arith.constant 0 : i32
    return %c0_i32, %c0_i32_0 : i32, i32
  }
  func.func @transform_4(%arg0: i32) -> (i32, i32) {
    %c0_i32 = arith.constant 0 : i32
    %c0_i32_0 = arith.constant 0 : i32
    %c0_i32_1 = arith.constant 0 : i32
    return %c0_i32, %c0_i32_0 : i32, i32
  }
  func.func @transform_5(%arg0: i32) -> (i32, i32) {
    %c0_i32 = arith.constant 0 : i32
    %c0_i32_0 = arith.constant 0 : i32
    %c0_i32_1 = arith.constant 0 : i32
    return %c0_i32, %c0_i32_0 : i32, i32
  }
  func.func @transform_6(%arg0: i32) -> (i32, i32) {
    %c0_i32 = arith.constant 0 : i32
    %c0_i32_0 = arith.constant 0 : i32
    %c0_i32_1 = arith.constant 0 : i32
    return %c0_i32, %c0_i32_0 : i32, i32
  }
  func.func @transform_7(%arg0: i32) -> (i32, i32) {
    %c0_i32 = arith.constant 0 : i32
    %c0_i32_0 = arith.constant 0 : i32
    %c0_i32_1 = arith.constant 0 : i32
    return %c0_i32, %c0_i32_0 : i32, i32
  }
  func.func @transform_8(%arg0: i32) -> (i32, i32) {
    %c0_i32 = arith.constant 0 : i32
    %c0_i32_0 = arith.constant 0 : i32
    return %arg0, %c0_i32 : i32, i32
  }
}

</mosaic_0001>

<bundles_post_ra>
// kernel: dnn_forward.1
= control target key start
LH: loop header
LB: loop body
LE: loop exit
PB: predicated region body
PF: predicated region fallthrough
CT: control target
= control target key end

     0   :  { %13 = vsyncpa [#allocation3], 0  ;;  %s656_s0 = inlined_call_operand.vmem [shape: f32[3], index: 0, kind: input, shape index: {}]   ;;  %s657_s1 = inlined_call_operand.vmem [shape: f32[8,3,32], index: 1, kind: input, shape index: {}]   ;;  %s658_s2 = inlined_call_operand.vmem [shape: f32[32,32], index: 2, kind: input, shape index: {}]   ;;  %s659_s3 = inlined_call_operand.vmem [shape: f32[1,32], index: 3, kind: input, shape index: {}]   ;;  %s660_s4 = inlined_call_operand.vmem [shape: f32[32,32], index: 4, kind: input, shape index: {}]   ;;  %s661_s5 = inlined_call_operand.vmem [shape: f32[1,32], index: 5, kind: input, shape index: {}]   ;;  %s662_s6 = inlined_call_operand.vmem [shape: f32[32,4], index: 6, kind: input, shape index: {}]   ;;  %s663_s7 = inlined_call_operand.vmem [shape: f32[1,4], index: 7, kind: input, shape index: {}]   ;;  %s664_s8 = inlined_call_operand.vmem [shape: f32[8,4], index: 8, kind: output, shape index: {}]  }
   0x1   :  { %s20_s29 = sshll.u32 %s656_s0, 4  ;;  %s21_s29 = int_to_ptr.vmem [resolvable:$true] %s20_s29 }
   0x2   :  { %s497_s30 = scalar_lea.vmem %s21_s29, 16  ;;  %p502_p1 = scmp.lt.s32.totalorder %s21_s29, %s21_s29 }
   0x3   :  { %p498_p0 = scmp.ne.s32.totalorder %s21_s29, %s497_s30  ;;  %p503_p2 = scmp.lt.s32.totalorder %s497_s30, %s497_s30 }
   0x5   :  { %p504_p3 = por %p503_p2, %p502_p1 }
   0x7   :  { %p505_p4 = pnand %p504_p3, %p498_p0 }
   0x9   :  { %508 = shalt.err (!%p505_p4)
}
   0xa   :  { %s511_s9 = smov [#allocation2]  }
   0xb   :  { %23 = dma.vmem_to_smem %s21_s29, 16, %s511_s9, [#allocation3]  }
   0xc   :  { %509 = dma.done.wait [#allocation3], 16  }
   0xd   :  { %510 = vsyncadd [#allocation3], 4294967280 }
   0xe   :  { %41 = sfence }
   0xf   :  { %v147_v0 = vld [vmem:[%s658_s2 + $0x18] sm:$0xff]  ;;  %v512_v1 = vmov 0.0   ;;  %v146_v2 = vld [vmem:[%s658_s2 + $0x10] sm:$0xff]  ;;  %vm513_vm0 = vmmov 0   ;;  %v145_v3 = vld [vmem:[%s658_s2 + $0x8] sm:$0xff]  ;;  %s50_s15 = sld [smem:[#allocation2]] }
  0x10   :  { %457 = vmatprep.subr.mxu0 %v512_v1  ;;  %465 = vmatprep.mubr.msk.f32.mxu0 %vm513_vm0, %v512_v1  ;;  %v144_v4 = vld [vmem:[%s658_s2] sm:$0xff]  ;;  %s434_s18 = sld [smem:[#allocation2 + $0x1]]  ;;  %v44_v7 = vld [vmem:[%s657_s1 + $0x8] sm:$0x7]  ;;  %v45_v9 = vld [vmem:[%s657_s1 + $0xc] sm:$0x7] }
  0x11   :  { %458 = vmatpush3.msra.mxu0 %v147_v0  ;;  %468 = vmatprep.subr.mxu1 %v512_v1  ;;  %s435_s19 = sld [smem:[#allocation2 + $0x2]]  ;;  %v42_v5 = vld [vmem:[%s657_s1] sm:$0x7]  ;;  %v43_v6 = vld [vmem:[%s657_s1 + $0x4] sm:$0x7]  ;;  %vm164_vm1 = vcmask 1041409  }
  0x12   :  { %459 = vmatprep.subr.mxu0 %v512_v1  ;;  %476 = vmatprep.mubr.msk.f32.mxu1 %vm513_vm0, %v512_v1  ;;  %v46_v10 = vld [vmem:[%s657_s1 + $0x10] sm:$0x7]  ;;  %v47_v11 = vld [vmem:[%s657_s1 + $0x14] sm:$0x7]  ;;  %v48_v14 = vld [vmem:[%s657_s1 + $0x18] sm:$0x7] }
  0x13   :  { %460 = vmatpush3.msra.mxu0 %v146_v2  ;;  %v49_v15 = vld [vmem:[%s657_s1 + $0x1c] sm:$0x7]  ;;  %vm167_vm2 = vcmask 1042434   ;;  %vm170_vm3 = vcmask 1043459   ;;  %vm173_vm4 = vcmask 1044484   ;;  %vm176_vm5 = vcmask 1045509  }
  0x14   :  { %461 = vmatprep.subr.mxu0 %v512_v1  ;;  %vm179_vm6 = vcmask 1046534   ;;  %vm182_vm7 = vcmask 1047559   ;;  %vm184_vm8 = vcmask 261120   ;;  %vm427_vm9 = vcmask 31744  }
  0x15   :  { %462 = vmatpush3.msra.mxu0 %v145_v3  ;;  %v51_v8 = vstv %s50_s15 }
  0x16   :  { %463 = vmatprep.subr.mxu0 %v512_v1  ;;  %v52_v12 = vmul.f32 %v51_v8, %v42_v5  ;;  %v53_v13 = vmul.f32 %v51_v8, %v43_v6  ;;  %v54_v16 = vmul.f32 %v51_v8, %v44_v7  ;;  %v55_v17 = vmul.f32 %v51_v8, %v45_v9 }
  0x17   :  { %464 = vmatpush3.msra.mxu0 %v144_v4  ;;  %v56_v18 = vmul.f32 %v51_v8, %v46_v10  ;;  %v57_v19 = vmul.f32 %v51_v8, %v47_v11  ;;  %v58_v20 = vmul.f32 %v51_v8, %v48_v14  ;;  %v59_v21 = vmul.f32 %v51_v8, %v49_v15 }
  0x18   :  { %479 = vmatprep.subr.mxu0 %v512_v1  ;;  %v61_v22 = vstv %s434_s18  ;;  %v103_v23 = vstv %s435_s19 }
  0x19   :  { %v62_v24 = vmul.f32 %v61_v22, %v42_v5  ;;  %v63_v25 = vmul.f32 %v61_v22, %v43_v6  ;;  %v64_v26 = vmul.f32 %v61_v22, %v44_v7  ;;  %v65_v27 = vmul.f32 %v61_v22, %v45_v9 }
  0x1a   :  { %v66_v28 = vmul.f32 %v61_v22, %v46_v10  ;;  %v67_v29 = vmul.f32 %v61_v22, %v47_v11  ;;  %v68_v30 = vmul.f32 %v61_v22, %v48_v14  ;;  %v69_v31 = vmul.f32 %v61_v22, %v49_v15 }
  0x1b   :  { %v78_v32 = vrot.slane %v62_v24, 1  ;;  %v79_v33 = vrot.slane %v63_v25, 1  ;;  %v80_v34 = vrot.slane %v64_v26, 1  ;;  %v81_v35 = vrot.slane %v65_v27, 1  ;;  %v260_v24 = vld [vmem:[%s660_s4 + $0x10] sm:$0xff]  ;;  %v259_v25 = vld [vmem:[%s660_s4 + $0x8] sm:$0xff] }
  0x1c   :  { %v82_v36 = vrot.slane %v66_v28, 1  ;;  %v83_v37 = vrot.slane %v67_v29, 1  ;;  %v84_v38 = vrot.slane %v68_v30, 1  ;;  %v85_v39 = vrot.slane %v69_v31, 1  ;;  %v258_v26 = vld [vmem:[%s660_s4] sm:$0xff] }
  0x1d   :  { %v94_v40 = vadd.f32 %v78_v32, %v52_v12  ;;  %v95_v41 = vadd.f32 %v79_v33, %v53_v13  ;;  %v96_v42 = vadd.f32 %v80_v34, %v54_v16  ;;  %v97_v43 = vadd.f32 %v81_v35, %v55_v17  ;;  %v436_v27 = vld [vmem:[%s659_s3] ss:$0 sm:$0xff]  ;;  %v346_v32 = vld [vmem:[%s662_s6 + $0x18] sm:$0xff]  ;;  %v345_v33 = vld [vmem:[%s662_s6 + $0x10] sm:$0xff] }
  0x1e   :  { %v98_v44 = vadd.f32 %v82_v36, %v56_v18  ;;  %v99_v45 = vadd.f32 %v83_v37, %v57_v19  ;;  %v100_v46 = vadd.f32 %v84_v38, %v58_v20  ;;  %v101_v47 = vadd.f32 %v85_v39, %v59_v21  ;;  %v344_v34 = vld [vmem:[%s662_s6 + $0x8] sm:$0xff]  ;;  %v343_v35 = vld [vmem:[%s662_s6] sm:$0xff] }
  0x1f   :  { %v104_v48 = vmul.f32 %v103_v23, %v42_v5  ;;  %v105_v49 = vmul.f32 %v103_v23, %v43_v6  ;;  %v106_v50 = vmul.f32 %v103_v23, %v44_v7  ;;  %v107_v51 = vmul.f32 %v103_v23, %v45_v9  ;;  %v438_v36 = vld [vmem:[%s661_s5] ss:$0 sm:$0xff] }
  0x20   :  { %v108_v52 = vmul.f32 %v103_v23, %v46_v10  ;;  %v109_v53 = vmul.f32 %v103_v23, %v47_v11  ;;  %v110_v54 = vmul.f32 %v103_v23, %v48_v14  ;;  %v111_v55 = vmul.f32 %v103_v23, %v49_v15  ;;  %v261_v23 = vld [vmem:[%s660_s4 + $0x18] sm:$0xff] }
  0x21   :  { %v120_v56 = vrot.slane %v104_v48, 2  ;;  %v121_v57 = vrot.slane %v105_v49, 2  ;;  %v122_v58 = vrot.slane %v106_v50, 2  ;;  %v123_v59 = vrot.slane %v107_v51, 2  ;;  %469 = vmatpush3.msra.mxu1 %v261_v23 }
  0x22   :  { %v124_v60 = vrot.slane %v108_v52, 2  ;;  %v125_v61 = vrot.slane %v109_v53, 2  ;;  %v126_v62 = vrot.slane %v110_v54, 2  ;;  %v127_v63 = vrot.slane %v111_v55, 2  ;;  %470 = vmatprep.subr.mxu1 %v512_v1 }
  0x23   :  { %v136_v0 = vadd.f32 %v120_v56, %v94_v40  ;;  %v137_v2 = vadd.f32 %v121_v57, %v95_v41  ;;  %v138_v3 = vadd.f32 %v122_v58, %v96_v42  ;;  %v139_v4 = vadd.f32 %v123_v59, %v97_v43  ;;  %471 = vmatpush3.msra.mxu1 %v260_v24  ;;  %v440_v41 = vld [vmem:[%s663_s7] ss:$0 sm:$0xff] }
  0x24   :  { %v140_v5 = vadd.f32 %v124_v60, %v98_v44  ;;  %v141_v6 = vadd.f32 %v125_v61, %v99_v45  ;;  %v142_v7 = vadd.f32 %v126_v62, %v100_v46  ;;  %v143_v8 = vadd.f32 %v127_v63, %v101_v47  ;;  %472 = vmatprep.subr.mxu1 %v512_v1 }
  0x25   :  { %v163_v9 = vrot.slane %v137_v2, 7  ;;  %v166_v10 = vrot.slane %v138_v3, 6  ;;  %v169_v11 = vrot.slane %v139_v4, 5  ;;  %473 = vmatpush3.msra.mxu1 %v259_v25 }
  0x26   :  { %v172_v12 = vrot.slane %v140_v5, 4  ;;  %v175_v14 = vrot.slane %v141_v6, 3  ;;  %v178_v16 = vrot.slane %v142_v7, 2  ;;  %v181_v18 = vrot.slane %v143_v8, 1  ;;  %474 = vmatprep.subr.mxu1 %v512_v1 }
  0x27   :  { %v165_v13 = vsel %vm164_vm1, %v163_v9, %v136_v0  ;;  %475 = vmatpush3.msra.mxu1 %v258_v26 }
  0x28   :  { %v168_v15 = vsel %vm167_vm2, %v166_v10, %v165_v13 }
  0x29   :  { %v171_v17 = vsel %vm170_vm3, %v169_v11, %v168_v15 }
  0x2a   :  { %v174_v19 = vsel %vm173_vm4, %v172_v12, %v171_v17 }
  0x2b   :  { %v177_v20 = vsel %vm176_vm5, %v175_v14, %v174_v19 }
  0x2c   :  { %v180_v21 = vsel %vm179_vm6, %v178_v16, %v177_v20 }
  0x2d   :  { %v183_v22 = vsel %vm182_vm7, %v181_v18, %v180_v21 }
  0x2e   :  { %466 = vmatmul.mubr.msk.f32.vlgmr.msra.gmra.mxu0 %vm184_vm8, %v183_v22 }
  0x2f   :  { %487 = vmatprep.mubr.msk.f32.mxu0 %vm513_vm0, %v512_v1  ;;  %480 = vmatpush3.msra.mxu0 %v346_v32 }
  0x30   :  { %481 = vmatprep.subr.mxu0 %v512_v1 }
  0x31   :  { %482 = vmatpush3.msra.mxu0 %v345_v33 }
  0x32   :  { %483 = vmatprep.subr.mxu0 %v512_v1 }
  0x33   :  { %484 = vmatpush3.msra.mxu0 %v344_v34 }
  0x34   :  { %485 = vmatprep.subr.mxu0 %v512_v1 }
  0x35   :  { %486 = vmatpush3.msra.mxu0 %v343_v35 }
  0xee   :  { %v253_v28 = vpop.f32.mrf.mxu0 }
  0xef   :  { %v254_v29 = vadd.f32 %v436_v27, %v253_v28 }
  0xf0   :  { %v467_v30 = vpop.f32.mrf.mxu0 }
  0xf1   :  { %493 = vtanh.f32 %v254_v29 }
  0xfe   :  { %v494_v31 = vpop.eup %493 }
  0xff   :  { %477 = vmatmul.mubr.msk.f32.vlgmr.msra.gmra.mxu1 %vm184_vm8, %v494_v31 }
 0x1bf   :  { %v338_v37 = vpop.f32.mrf.mxu1 }
 0x1c0   :  { %v339_v38 = vadd.f32 %v438_v36, %v338_v37 }
 0x1c1   :  { %v478_v39 = vpop.f32.mrf.mxu1 }
 0x1c2   :  { %495 = vtanh.f32 %v339_v38 }
 0x1cf   :  { %v496_v40 = vpop.eup %495 }
 0x1d0   :  { %488 = vmatmul.mubr.msk.f32.vlgmr.msra.gmra.mxu0 %vm184_vm8, %v496_v40 }
 0x290   :  { %v423_v42 = vpop.f32.mrf.mxu0 }
 0x291   :  { %v424_v43 = vadd.f32 %v440_v41, %v423_v42 }
 0x292   :  { %v489_v1 = vpop.f32.mrf.mxu0 }
 0x293   :  { %428 = vst.msk [vmem:[%s664_s8] sm:$0xff] %vm427_vm9, %v424_v43 }
 0x294   :  { %433 = vsyncpa [#allocation3], 1 }

</bundles_post_ra>
